<compile_context>
chip_gen: v6e
topology: v6e:2x2x1
jax: 0.10.0
libtpu: 0.0.40
codegen_flags: <defaults>
</compile_context>

<pallas_src>
import functools

import numpy as np

import jax
import jax.numpy as jnp
from jax.experimental import pallas as pl
from jax.experimental.pallas import tpu as pltpu

# NOTE(review): eps / bias placement follow the pure-JAX reference below
# (nn.Conv2d applies its bias inside the conv, so demodulation scales it too).
EPS = 1e-6
LEAKY_SLOPE = 0.2

_TAPS = tuple((kh, kw) for kh in range(3) for kw in range(3))


# ----------------------------------------------------------------------------
# Kernel 1: StyleBlock alone (the spec module):  s = 1 + re_alpha * affine(mod)
# ----------------------------------------------------------------------------
def _style_block_kernel(mod_ref, wa_ref, ba_ref, o_ref):
    o_ref[...] = 1.0 + jnp.dot(mod_ref[...], wa_ref[...],
                               preferred_element_type=jnp.float32) + ba_ref[...]


def style_block(mod, wa, ba, re_alpha):
    """mod: (N, M); wa: (S, M); ba: (S,); re_alpha: scalar  ->  (N, S)."""
    N, M = mod.shape
    S = wa.shape[0]
    wat = (re_alpha * wa).T.astype(jnp.float32)          # (M, S), alpha folded
    bat = (re_alpha * ba).reshape(1, S).astype(jnp.float32)
    return pl.pallas_call(
        _style_block_kernel,
        out_shape=jax.ShapeDtypeStruct((N, S), jnp.float32),
    )(mod.astype(jnp.float32), wat, bat)


# ----------------------------------------------------------------------------
# Kernel 2: fused StyleBlock + ModulatedConv2d(3x3) + LeakyReLU, two stages
# ----------------------------------------------------------------------------
def _tap_masks(H, W):
    """(9, H*W) float32 validity masks for the 3x3 'same'-padding taps."""
    hh, ww = np.meshgrid(np.arange(H), np.arange(W), indexing="ij")
    masks = np.zeros((9, H * W), np.float32)
    for t, (kh, kw) in enumerate(_TAPS):
        dh, dw = kh - 1, kw - 1
        valid = (hh + dh >= 0) & (hh + dh < H) & (ww + dw >= 0) & (ww + dw < W)
        masks[t] = valid.reshape(-1).astype(np.float32)
    return jnp.asarray(masks)


def _conv_stage(x, mod_v, masks, wa_ref, ba_ref, w_ref, b_ref, p_ref,
                *, C, D, H, W, eps, slope):
    """One StyleBlock + modulated 3x3 conv + demod + LeakyReLU for one sample.

    x      : (C, H*W) value (NCHW with HW flattened on the lane axis)
    mod_v  : (1, M) value
    masks  : (9, H*W) value (border-validity masks per tap)
    wa_ref : (M, 9*C)  affine weight, re_alpha folded, tiled per tap
    ba_ref : (1, 9*C)  affine bias,   re_alpha folded, tiled per tap
    w_ref  : (D, 9*C)  conv weight, column (kh*3+kw)*C + c
    b_ref  : (D, 1)    conv bias
    p_ref  : (9*C, H*W) VMEM scratch for the im2col patch matrix
    returns (D, H*W)
    """
    L = H * W

    # StyleBlock: s = 1 + re_alpha * affine(mod)  (tiled so col t*C+c holds s[c]).
    s = 1.0 + jnp.dot(mod_v, wa_ref[...],
                      preferred_element_type=jnp.float32) + ba_ref[...]       # (1, 9C)

    # Fold the per-sample channel modulation into the (tiny) weights instead of
    # scaling the whole feature map: conv(x * s) == conv_{w*s}(x).
    w_mod = w_ref[...] * s                                                    # (D, 9C)
    # Demodulation factor on the EUP (rsqrt), broadcast over lanes.
    demod = jax.lax.rsqrt(jnp.sum(w_mod * w_mod, axis=1, keepdims=True) + eps)  # (D, 1)

    # im2col in VMEM: patches[t*C + c, p] = x[c, p + off(t)], zero at the borders.
    # Padding is realized with the per-tap masks -- no padded copy of x anywhere.
    p_ref[...] = jnp.zeros(p_ref.shape, p_ref.dtype)
    for t, (kh, kw) in enumerate(_TAPS):
        off = (kh - 1) * W + (kw - 1)
        src0, dst0 = max(0, off), max(0, -off)
        n = L - abs(off)
        vals = x[:, src0:src0 + n] * masks[t:t + 1, dst0:dst0 + n]
        p_ref[t * C:(t + 1) * C, dst0:dst0 + n] = vals

    # One MXU matmul, contraction K = 9*C, output lanes = H*W (lane-dense).
    y = jnp.dot(w_mod, p_ref[...], preferred_element_type=jnp.float32)        # (D, L)
    # Conv bias is applied inside nn.Conv2d, i.e. before demodulation.
    y = (y + b_ref[...]) * demod
    # LeakyReLU as a single vmax.
    return jnp.maximum(y, slope * y)


def _modnet_kernel(mod_ref, x_ref, masks_ref,
                   wa1_ref, ba1_ref, w1_ref, b1_ref,
                   wa2_ref, ba2_ref, w2_ref, b2_ref,
                   o_ref, p1_ref, p2_ref,
                   *, H, W, Cin, Cmid, Cout, eps, slope):
    mod_v = mod_ref[0]                       # (1, M)
    masks = masks_ref[...]                   # (9, H*W)
    x = x_ref[0]                             # (Cin, H*W)

    y1 = _conv_stage(x, mod_v, masks, wa1_ref, ba1_ref, w1_ref, b1_ref, p1_ref,
                     C=Cin, D=Cmid, H=H, W=W, eps=eps, slope=slope)
    y2 = _conv_stage(y1, mod_v, masks, wa2_ref, ba2_ref, w2_ref, b2_ref, p2_ref,
                     C=Cmid, D=Cout, H=H, W=W, eps=eps, slope=slope)

    o_ref[0] = y2.astype(o_ref.dtype)        # (Cout, H*W): lane-dense store


@jax.jit
def modnet_basic_block(x_nchw, mod, params):
    """Fused forward. x_nchw: (N, Cin, H, W), mod: (N, M) -> (N, Cout, H, W)."""
    N, Cin, H, W = x_nchw.shape
    Cmid = params["wc1"].shape[0]
    Cout = params["wc2"].shape[0]
    M = mod.shape[1]
    L = H * W

    # NCHW kept as-is; flattening HW onto the lane axis is a free contiguous reshape.
    x_flat = x_nchw.reshape(N, Cin, L).astype(jnp.float32)
    mod3 = mod[:, None, :].astype(jnp.float32)                     # (N, 1, M)
    masks = _tap_masks(H, W)                                       # (9, L)

    def affine_params(wa, ba, ra, C):
        wat = jnp.tile((ra * wa).T.astype(jnp.float32), (1, 9))             # (M, 9C)
        bat = jnp.tile((ra * ba).reshape(1, C).astype(jnp.float32), (1, 9))  # (1, 9C)
        return wat, bat

    def conv_params(wc, bc, C, D):
        w = jnp.transpose(wc, (0, 2, 3, 1)).reshape(D, 9 * C).astype(jnp.float32)
        b = bc.reshape(D, 1).astype(jnp.float32)
        return w, b

    wa1t, ba1t = affine_params(params["wa1"], params["ba1"], params["ra1"], Cin)
    wa2t, ba2t = affine_params(params["wa2"], params["ba2"], params["ra2"], Cmid)
    w1, b1 = conv_params(params["wc1"], params["bc1"], Cin, Cmid)
    w2, b2 = conv_params(params["wc2"], params["bc2"], Cmid, Cout)

    kernel = functools.partial(_modnet_kernel, H=H, W=W, Cin=Cin, Cmid=Cmid,
                               Cout=Cout, eps=EPS, slope=LEAKY_SLOPE)

    out_flat = pl.pallas_call(
        kernel,
        out_shape=jax.ShapeDtypeStruct((N, Cout, L), jnp.float32),
        grid=(N,),
        in_specs=[
            pl.BlockSpec((1, 1, M), lambda n: (n, 0, 0)),        # mod
            pl.BlockSpec((1, Cin, L), lambda n: (n, 0, 0)),      # x (NCHW, HW flat)
            pl.BlockSpec((9, L), lambda n: (0, 0)),              # tap border masks
            pl.BlockSpec((M, 9 * Cin), lambda n: (0, 0)),        # affine1 W (alpha folded)
            pl.BlockSpec((1, 9 * Cin), lambda n: (0, 0)),        # affine1 b
            pl.BlockSpec((Cmid, 9 * Cin), lambda n: (0, 0)),     # conv1 W (D, 9*Cin)
            pl.BlockSpec((Cmid, 1), lambda n: (0, 0)),           # conv1 b
            pl.BlockSpec((M, 9 * Cmid), lambda n: (0, 0)),       # affine2 W
            pl.BlockSpec((1, 9 * Cmid), lambda n: (0, 0)),       # affine2 b
            pl.BlockSpec((Cout, 9 * Cmid), lambda n: (0, 0)),    # conv2 W
            pl.BlockSpec((Cout, 1), lambda n: (0, 0)),           # conv2 b
        ],
        out_specs=pl.BlockSpec((1, Cout, L), lambda n: (n, 0, 0)),
        scratch_shapes=[
            pltpu.VMEM((9 * Cin, L), jnp.float32),               # im2col patches, stage 1
            pltpu.VMEM((9 * Cmid, L), jnp.float32),              # im2col patches, stage 2
        ],
        compiler_params=pltpu.CompilerParams(
            dimension_semantics=("parallel",),                   # N>=2 -> both v7x TCs
            vmem_limit_bytes=32 * 1024 * 1024),
    )(mod3, x_flat, masks, wa1t, ba1t, w1, b1, wa2t, ba2t, w2, b2)

    return out_flat.reshape(N, Cout, H, W)


# ----------------------------------------------------------------------------
# Pure-JAX reference (mirrors the PyTorch modules) for correctness checking
# ----------------------------------------------------------------------------
def _ref_forward(x_nchw, mod, p):
    def style(wa, ba, ra):
        return 1.0 + ra * (mod @ wa.T + ba)

    def modconv(x, s, wc, bc):
        x_mod = x * s[:, :, None, None]
        y = jax.lax.conv_general_dilated(
            x_mod, wc, (1, 1), ((1, 1), (1, 1)),
            dimension_numbers=("NCHW", "OIHW", "NCHW")) + bc[None, :, None, None]
        wsq = jnp.sum(wc * wc, axis=(2, 3))                      # (Cout, Cin)
        sigma = (s * s) @ wsq.T                                  # (N, Cout)
        return y * (1.0 / jnp.sqrt(sigma + EPS))[:, :, None, None]

    def leaky(v):
        return jnp.where(v >= 0, v, LEAKY_SLOPE * v)

    y1 = leaky(modconv(x_nchw, style(p["wa1"], p["ba1"], p["ra1"]),
                       p["wc1"], p["bc1"]))
    y2 = leaky(modconv(y1, style(p["wa2"], p["ba2"], p["ra2"]),
                       p["wc2"], p["bc2"]))
    return y2


if __name__ == "__main__":
    # Small shapes consistent with the module:
    #   in_features=4, mid_features=8, out_features=4, mod_features=8, H=W=16, N=2
    N, Cin, Cmid, Cout, M, H, W = 2, 4, 8, 4, 8, 16, 16

    key = jax.random.PRNGKey(0)
    ks = jax.random.split(key, 10)

    x = jax.random.normal(ks[0], (N, Cin, H, W), jnp.float32)
    mod = jax.random.normal(ks[1], (N, M), jnp.float32)

    params = {
        # StyleBlock 1 (Linear M -> Cin, rezero alpha)
        "wa1": 0.3 * jax.random.normal(ks[2], (Cin, M), jnp.float32),
        "ba1": 0.1 * jax.random.normal(ks[3], (Cin,), jnp.float32),
        "ra1": jnp.float32(0.5),   # nonzero so modulation is actually exercised
        # ModulatedConv2d 1 (Cin -> Cmid, k=3)
        "wc1": 0.2 * jax.random.normal(ks[4], (Cmid, Cin, 3, 3), jnp.float32),
        "bc1": 0.1 * jax.random.normal(ks[5], (Cmid,), jnp.float32),
        # StyleBlock 2 (Linear M -> Cmid)
        "wa2": 0.3 * jax.random.normal(ks[6], (Cmid, M), jnp.float32),
        "ba2": 0.1 * jax.random.normal(ks[7], (Cmid,), jnp.float32),
        "ra2": jnp.float32(0.7),
        # ModulatedConv2d 2 (Cmid -> Cout, k=3)
        "wc2": 0.2 * jax.random.normal(ks[8], (Cout, Cmid, 3, 3), jnp.float32),
        "bc2": 0.1 * jax.random.normal(ks[9], (Cout,), jnp.float32),
    }

    # 1) StyleBlock alone (the spec module) as its own Pallas kernel.
    s1 = jax.block_until_ready(style_block(mod, params["wa1"], params["ba1"],
                                           params["ra1"]))
    s1_ref = 1.0 + params["ra1"] * (mod @ params["wa1"].T + params["ba1"])
    assert s1.shape == (N, Cin), s1.shape
    assert jnp.allclose(s1, s1_ref, atol=1e-5, rtol=1e-5), float(
        jnp.max(jnp.abs(s1 - s1_ref)))

    # 2) Fused StyleBlock + ModulatedConv2d + LeakyReLU block.
    out = jax.block_until_ready(modnet_basic_block(x, mod, params))
    ref = jax.block_until_ready(_ref_forward(x, mod, params))

    assert out.shape == (N, Cout, H, W), out.shape
    assert jnp.allclose(out, ref, atol=1e-4, rtol=1e-4), float(
        jnp.max(jnp.abs(out - ref)))

    print("KERNEL_OK")
</pallas_src>

<mosaic_0001>
module attributes {stable_mosaic.version = 11 : i64} {
  func.func @_style_block_kernel(%arg0: memref<2x8xf32, #tpu.memory_space<vmem>>, %arg1: memref<8x4xf32, #tpu.memory_space<vmem>>, %arg2: memref<1x4xf32, #tpu.memory_space<vmem>>, %arg3: memref<2x4xf32, #tpu.memory_space<vmem>>) attributes {dimension_semantics = [], scalar_prefetch = 0 : i64, scratch_operands = 0 : i64, tpu.core_type = #tpu.core_type<tc>} {
    %c0 = arith.constant 0 : index
    %c0_0 = arith.constant 0 : index
    %0 = vector.load %arg0[%c0, %c0_0] : memref<2x8xf32, #tpu.memory_space<vmem>>, vector<2x8xf32>
    %c0_1 = arith.constant 0 : index
    %c0_2 = arith.constant 0 : index
    %1 = vector.load %arg1[%c0_1, %c0_2] : memref<8x4xf32, #tpu.memory_space<vmem>>, vector<8x4xf32>
    %cst = arith.constant dense<0.000000e+00> : vector<2x4xf32>
    %2 = tpu.matmul %0, %1, %cst {dimension_numbers = #tpu.dot_dimension_numbers<[1], [0], [0], [1], [0, 0, 1, 1], [], []>} : vector<2x8xf32>, vector<8x4xf32>, vector<2x4xf32> -> vector<2x4xf32>
    %cst_3 = arith.constant 1.000000e+00 : f32
    %3 = vector.broadcast %cst_3 : f32 to vector<2x4xf32>
    %4 = arith.addf %3, %2 : vector<2x4xf32>
    %c0_4 = arith.constant 0 : index
    %c0_5 = arith.constant 0 : index
    %5 = vector.load %arg2[%c0_4, %c0_5] : memref<1x4xf32, #tpu.memory_space<vmem>>, vector<1x4xf32>
    %6 = vector.broadcast %5 : vector<1x4xf32> to vector<2x4xf32>
    %7 = arith.addf %4, %6 : vector<2x4xf32>
    %c0_6 = arith.constant 0 : index
    %c0_7 = arith.constant 0 : index
    %8 = vector.load %arg3[%c0_6, %c0_7] : memref<2x4xf32, #tpu.memory_space<vmem>>, vector<2x4xf32>
    tpu.vector_store %arg3[%c0_6, %c0_7], %7 {strides = array<i32>} : memref<2x4xf32, #tpu.memory_space<vmem>>, vector<2x4xf32>,
    return
  }
}

</mosaic_0001>

<bundles_post_ra>
// kernel: tpu_custom_call.1
= control target key start
LH: loop header
LB: loop body
LE: loop exit
PB: predicated region body
PF: predicated region fallthrough
CT: control target
= control target key end

     0   :  { %vm17_vm0 = vcmask 64512   ;;  %v149_v2 = vmov 0.0   ;;  %vm150_vm1 = vmmov 0   ;;  %s184_s0 = inlined_call_operand.vmem [shape: f32[2,8], index: 0, kind: input, shape index: {}]   ;;  %s185_s1 = inlined_call_operand.vmem [shape: f32[8,4], index: 1, kind: input, shape index: {}]   ;;  %s186_s2 = inlined_call_operand.vmem [shape: f32[1,4], index: 2, kind: input, shape index: {}]   ;;  %s187_s3 = inlined_call_operand.hbm [shape: f32[2,4], index: 3, kind: output, shape index: {}]  }
   0x1   :  { %v16_v0 = vld [vmem:[%s185_s1] sm:$0xff]  ;;  %119 = vmatprep.subr.mxu0 %v149_v2  ;;  %121 = vmatprep.mubr.msk.f32.mxu0 %vm150_vm1, %v149_v2 }
   0x2   :  { %v15_v1 = vld [vmem:[%s184_s0] sm:$0x3] }
   0x3   :  { %8 = vsyncpa [#allocation3], 0  ;;  %120 = vmatpush3.msra.mxu0 %v16_v0  ;;  %v116_v4 = vld [vmem:[%s186_s2] ss:$0 sm:$0xff]  ;;  %s151_s18 = smov [#allocation2]   ;;  %vm99_vm2 = vcmask 25600  }
   0x4   :  { %122 = vmatmul.mubr.msk.f32.vlgmr.msra.gmra.mxu0 %vm17_vm0, %v15_v1  ;;  %s107_s19 = sshll.u32 %s151_s18, 4  ;;  %s108_s19 = int_to_ptr.vmem [resolvable:$true] %s107_s19 }
   0x5   :  { %s127_s0 = scalar_lea.vmem %s108_s19, 32  ;;  %p132_p1 = scmp.lt.s32.totalorder %s108_s19, %s108_s19 }
   0x6   :  { %p128_p0 = scmp.ne.s32.totalorder %s108_s19, %s127_s0  ;;  %p133_p2 = scmp.lt.s32.totalorder %s127_s0, %s127_s0 }
   0x8   :  { %p134_p3 = por %p133_p2, %p132_p1 }
   0xa   :  { %p135_p4 = pnand %p134_p3, %p128_p0 }
  0xc4   :  { %v87_v3 = vpop.f32.mrf.mxu0 }
  0xc5   :  { %v88_v5 = vadd.f32 1.0, %v87_v3 }
  0xc6   :  { %v123_v6 = vpop.f32.mrf.mxu0 }
  0xc7   :  { %v98_v7 = vadd.f32 %v116_v4, %v88_v5 }
  0xc9   :  { %100 = vst.msk [vmem:[#allocation2] sm:$0x3] %vm99_vm2, %v98_v7 }
  0xca   :  { %138 = shalt.err (!%p135_p4)
}
  0xcb   :  { %110 = dma.vmem_to_hbm [thread:$0]  %s108_s19, 32, %s187_s3, [#allocation3]  }
  0xcc   :  { %147 = dma.done.wait [#allocation3], 32  }
  0xcd   :  { %148 = vsyncadd [#allocation3], 4294967264 }
  0xce   :  { %114 = vsyncpa [#allocation3], 1 }

</bundles_post_ra>
